<compile_context>
chip_gen: v7x
topology: tpu7x:2x2x1
jax: 0.10.0
libtpu: 0.0.40
codegen_flags: <defaults>
</compile_context>

<pallas_src>
import functools

import jax
import jax.numpy as jnp
from jax.experimental import pallas as pl
from jax.experimental.pallas import tpu as pltpu


def _round_up(n, m):
    return ((n + m - 1) // m) * m


def _contextual_attention_kernel(x_ref, w1_ref, w2_ref, w3_ref, b12_ref, b3_ref, out_ref):
    # Attention over a length-1 sequence is the identity, so the forward is mlp(x).
    x = x_ref[...]                                                          # (bn, E) bf16

    h1 = jnp.dot(x, w1_ref[...], preferred_element_type=jnp.float32)       # (bn, H) f32 acc
    h1 = jnp.maximum(h1 + b12_ref[0:1, :], 0.0)                            # bias/ReLU in f32

    h2 = jnp.dot(h1.astype(w2_ref.dtype), w2_ref[...],
                 preferred_element_type=jnp.float32)                       # (bn, H)
    h2 = jnp.maximum(h2 + b12_ref[1:2, :], 0.0)

    logits = jnp.dot(h2.astype(w3_ref.dtype), w3_ref[...],
                     preferred_element_type=jnp.float32)                   # (bn, K)
    out_ref[...] = (logits + b3_ref[...]).astype(out_ref.dtype)


def make_params(key, emb_size, num_class, hidden_size=128, dtype=jnp.float32):
    """Deterministic synthetic parameters (shapes follow ContextualAttention.__init__)."""
    ks = jax.random.split(key, 8)
    E, H, K = emb_size, hidden_size, num_class

    def w(k, shape, scale=0.05):
        return (scale * jax.random.normal(k, shape)).astype(dtype)

    return dict(
        # attention parameters (present in the module; dead in the forward output)
        attn_w=w(ks[0], (E, 1)),
        attn_b=jnp.zeros((1, 1), dtype),
        # mlp: Linear(E,H) -> ReLU -> Linear(H,H) -> ReLU -> Linear(H,K)
        w1=w(ks[1], (E, H)), b1=w(ks[2], (H,)),
        w2=w(ks[3], (H, H)), b2=w(ks[4], (H,)),
        w3=w(ks[5], (H, K)), b3=w(ks[6], (K,)),
    )


@functools.partial(jax.jit, static_argnames=("block_n", "compute_dtype", "core_parallel"))
def contextual_attention(x, params, *, block_n=1024, compute_dtype=jnp.bfloat16,
                         core_parallel=False):
    """Pallas forward of ContextualAttention (mask=None path)."""
    N, E = x.shape
    cd = jnp.dtype(compute_dtype)

    # bf16 operands feeding the MXU (f32 accumulation inside the kernel).
    xq = x.astype(cd)
    w1 = params["w1"].astype(cd)             # (E, H)
    w2 = params["w2"].astype(cd)             # (H, H)
    w3 = params["w3"].astype(cd)             # (H, K)
    H = w1.shape[1]
    K = w3.shape[1]

    # Biases stay f32 (bias-add / ReLU run in f32 on every chip generation).
    b12 = jnp.stack([params["b1"], params["b2"]], axis=0).astype(jnp.float32)   # (2, H)
    b3 = params["b3"].reshape(1, K).astype(jnp.float32)                          # (1, K)

    # Tall batch tile; ragged grid (no pre-pad copy), OOB output rows are masked on store.
    bn = _round_up(min(block_n, N), 8)
    grid = (pl.cdiv(N, bn),)

    def resident(arr):
        # Tiny weights: keep the full array in VMEM for every grid step.
        return pl.BlockSpec(arr.shape, lambda i: (0, 0))

    # VMEM budget: double-buffered x/out tiles + (double-buffered) resident weights,
    # with 2x headroom, clamped to [32 MiB, 64 MiB] (v7x physical VMEM is 64 MiB).
    out_itemsize = jnp.dtype(x.dtype).itemsize
    tile_bytes = 2 * (bn * E * cd.itemsize + bn * K * out_itemsize)
    weight_bytes = 2 * (w1.size * cd.itemsize + w2.size * cd.itemsize +
                        w3.size * cd.itemsize + b12.size * 4 + b3.size * 4)
    vmem_limit = int(min(64 << 20, max(32 << 20, 2 * (tile_bytes + weight_bytes))))

    batch_sem = pltpu.CORE_PARALLEL if core_parallel else "parallel"

    out = pl.pallas_call(
        _contextual_attention_kernel,
        out_shape=jax.ShapeDtypeStruct((N, K), x.dtype),
        grid=grid,
        in_specs=[
            pl.BlockSpec((bn, E), lambda i: (i, 0)),
            resident(w1), resident(w2), resident(w3),
            resident(b12), resident(b3),
        ],
        out_specs=pl.BlockSpec((bn, K), lambda i: (i, 0)),
        compiler_params=pltpu.CompilerParams(
            dimension_semantics=(batch_sem,),
            vmem_limit_bytes=vmem_limit,
        ),
    )(xq, w1, w2, w3, b12, b3)

    return out


def _reference(x, p, compute_dtype=None):
    """Pure-JAX reference mirroring the PyTorch forward exactly (mask=None).

    If compute_dtype is given, mirrors the kernel's mixed precision (bf16 MXU
    operands, f32 accumulation and bias/ReLU) for tight-tolerance comparison.
    """
    scores = jnp.tanh(x @ p["attn_w"])                 # (N, 1)
    a = jax.nn.softmax(scores, axis=-1)                # (N, 1) -> all ones
    attn_out = x * a                                   # == x

    if compute_dtype is None:
        def lin(v, w, b):
            return v @ w + b
    else:
        cd = jnp.dtype(compute_dtype)

        def lin(v, w, b):
            return jnp.dot(v.astype(cd), w.astype(cd),
                           preferred_element_type=jnp.float32) + b.astype(jnp.float32)

    h1 = jnp.maximum(lin(attn_out, p["w1"], p["b1"]), 0.0)
    h2 = jnp.maximum(lin(h1, p["w2"], p["b2"]), 0.0)
    return lin(h2, p["w3"], p["b3"])


if __name__ == "__main__":
    # Small shapes consistent with the module: batch=16, emb_size=16, hidden=32, num_class=4.
    N, E, H, K = 16, 16, 32, 4
    key = jax.random.PRNGKey(0)
    kx, kp = jax.random.split(key)
    x = jax.random.normal(kx, (N, E), dtype=jnp.float32)
    params = make_params(kp, emb_size=E, num_class=K, hidden_size=H)

    out = contextual_attention(x, params)
    out = jax.block_until_ready(out)

    ref_mixed = _reference(x, params, compute_dtype=jnp.bfloat16)  # same precision as kernel
    ref_f32 = _reference(x, params)                                # full-f32 PyTorch semantics
    assert out.shape == (N, K)
    assert jnp.allclose(out, ref_mixed, atol=1e-3, rtol=1e-3), "mismatch vs mixed-precision reference"
    assert jnp.allclose(out, ref_f32, atol=5e-2, rtol=0.0), "mismatch vs full-f32 reference"
    print("KERNEL_OK")
</pallas_src>

<mosaic_0001>
module attributes {stable_mosaic.version = 11 : i64} {
  func.func @_contextual_attention_kernel(%arg0: i32, %arg1: memref<16x16xbf16, #tpu.memory_space<vmem>>, %arg2: memref<16x32xbf16, #tpu.memory_space<vmem>>, %arg3: memref<32x32xbf16, #tpu.memory_space<vmem>>, %arg4: memref<32x4xbf16, #tpu.memory_space<vmem>>, %arg5: memref<2x32xf32, #tpu.memory_space<vmem>>, %arg6: memref<1x4xf32, #tpu.memory_space<vmem>>, %arg7: memref<16x4xf32, #tpu.memory_space<vmem>>) attributes {dimension_semantics = [#tpu.dimension_semantics<parallel>], iteration_bounds = array<i64: 1>, scalar_prefetch = 0 : i64, scratch_operands = 0 : i64, tpu.core_type = #tpu.core_type<tc>, window_params = [{transform_indices = @transform_0, window_bounds = array<i64: 16, 16>}, {pipeline_mode = #tpu.pipeline_mode<synchronous>, transform_indices = @transform_1, window_bounds = array<i64: 16, 32>}, {pipeline_mode = #tpu.pipeline_mode<synchronous>, transform_indices = @transform_2, window_bounds = array<i64: 32, 32>}, {pipeline_mode = #tpu.pipeline_mode<synchronous>, transform_indices = @transform_3, window_bounds = array<i64: 32, 4>}, {pipeline_mode = #tpu.pipeline_mode<synchronous>, transform_indices = @transform_4, window_bounds = array<i64: 2, 32>}, {pipeline_mode = #tpu.pipeline_mode<synchronous>, transform_indices = @transform_5, window_bounds = array<i64: 1, 4>}, {transform_indices = @transform_6, window_bounds = array<i64: 16, 4>}]} {
    %c0 = arith.constant 0 : index
    %c0_0 = arith.constant 0 : index
    %0 = vector.load %arg1[%c0, %c0_0] : memref<16x16xbf16, #tpu.memory_space<vmem>>, vector<16x16xbf16>
    %c0_1 = arith.constant 0 : index
    %c0_2 = arith.constant 0 : index
    %1 = vector.load %arg2[%c0_1, %c0_2] : memref<16x32xbf16, #tpu.memory_space<vmem>>, vector<16x32xbf16>
    %cst = arith.constant dense<0.000000e+00> : vector<16x32xf32>
    %2 = tpu.matmul %0, %1, %cst {dimension_numbers = #tpu.dot_dimension_numbers<[1], [0], [0], [1], [0, 0, 1, 1], [], []>} : vector<16x16xbf16>, vector<16x32xbf16>, vector<16x32xf32> -> vector<16x32xf32>
    %c0_3 = arith.constant 0 : index
    %c0_4 = arith.constant 0 : index
    %3 = vector.load %arg5[%c0_3, %c0_4] : memref<2x32xf32, #tpu.memory_space<vmem>>, vector<1x32xf32>
    %4 = vector.broadcast %3 : vector<1x32xf32> to vector<16x32xf32>
    %5 = arith.addf %2, %4 : vector<16x32xf32>
    %cst_5 = arith.constant 0.000000e+00 : f32
    %6 = vector.broadcast %cst_5 : f32 to vector<16x32xf32>
    %7 = arith.maximumf %5, %6 : vector<16x32xf32>
    %8 = arith.truncf %7 : vector<16x32xf32> to vector<16x32xbf16>
    %c0_6 = arith.constant 0 : index
    %c0_7 = arith.constant 0 : index
    %9 = vector.load %arg3[%c0_6, %c0_7] : memref<32x32xbf16, #tpu.memory_space<vmem>>, vector<32x32xbf16>
    %cst_8 = arith.constant dense<0.000000e+00> : vector<16x32xf32>
    %10 = tpu.matmul %8, %9, %cst_8 {dimension_numbers = #tpu.dot_dimension_numbers<[1], [0], [0], [1], [0, 0, 1, 1], [], []>} : vector<16x32xbf16>, vector<32x32xbf16>, vector<16x32xf32> -> vector<16x32xf32>
    %c1 = arith.constant 1 : index
    %c0_9 = arith.constant 0 : index
    %11 = vector.load %arg5[%c1, %c0_9] : memref<2x32xf32, #tpu.memory_space<vmem>>, vector<1x32xf32>
    %12 = vector.broadcast %11 : vector<1x32xf32> to vector<16x32xf32>
    %13 = arith.addf %10, %12 : vector<16x32xf32>
    %cst_10 = arith.constant 0.000000e+00 : f32
    %14 = vector.broadcast %cst_10 : f32 to vector<16x32xf32>
    %15 = arith.maximumf %13, %14 : vector<16x32xf32>
    %16 = arith.truncf %15 : vector<16x32xf32> to vector<16x32xbf16>
    %c0_11 = arith.constant 0 : index
    %c0_12 = arith.constant 0 : index
    %17 = vector.load %arg4[%c0_11, %c0_12] : memref<32x4xbf16, #tpu.memory_space<vmem>>, vector<32x4xbf16>
    %cst_13 = arith.constant dense<0.000000e+00> : vector<16x4xf32>
    %18 = tpu.matmul %16, %17, %cst_13 {dimension_numbers = #tpu.dot_dimension_numbers<[1], [0], [0], [1], [0, 0, 1, 1], [], []>} : vector<16x32xbf16>, vector<32x4xbf16>, vector<16x4xf32> -> vector<16x4xf32>
    %c0_14 = arith.constant 0 : index
    %c0_15 = arith.constant 0 : index
    %19 = vector.load %arg6[%c0_14, %c0_15] : memref<1x4xf32, #tpu.memory_space<vmem>>, vector<1x4xf32>
    %20 = vector.broadcast %19 : vector<1x4xf32> to vector<16x4xf32>
    %21 = arith.addf %18, %20 : vector<16x4xf32>
    %c0_16 = arith.constant 0 : index
    %c0_17 = arith.constant 0 : index
    %22 = vector.load %arg7[%c0_16, %c0_17] : memref<16x4xf32, #tpu.memory_space<vmem>>, vector<16x4xf32>
    tpu.vector_store %arg7[%c0_16, %c0_17], %21 {strides = array<i32>} : memref<16x4xf32, #tpu.memory_space<vmem>>, vector<16x4xf32>,
    return
  }
  func.func @transform_0(%arg0: i32) -> (i32, i32) {
    %c0_i32 = arith.constant 0 : i32
    %c0_i32_0 = arith.constant 0 : i32
    return %arg0, %c0_i32 : i32, i32
  }
  func.func @transform_1(%arg0: i32) -> (i32, i32) {
    %c0_i32 = arith.constant 0 : i32
    %c0_i32_0 = arith.constant 0 : i32
    %c0_i32_1 = arith.constant 0 : i32
    return %c0_i32, %c0_i32_0 : i32, i32
  }
  func.func @transform_2(%arg0: i32) -> (i32, i32) {
    %c0_i32 = arith.constant 0 : i32
    %c0_i32_0 = arith.constant 0 : i32
    %c0_i32_1 = arith.constant 0 : i32
    return %c0_i32, %c0_i32_0 : i32, i32
  }
  func.func @transform_3(%arg0: i32) -> (i32, i32) {
    %c0_i32 = arith.constant 0 : i32
    %c0_i32_0 = arith.constant 0 : i32
    %c0_i32_1 = arith.constant 0 : i32
    return %c0_i32, %c0_i32_0 : i32, i32
  }
  func.func @transform_4(%arg0: i32) -> (i32, i32) {
    %c0_i32 = arith.constant 0 : i32
    %c0_i32_0 = arith.constant 0 : i32
    %c0_i32_1 = arith.constant 0 : i32
    return %c0_i32, %c0_i32_0 : i32, i32
  }
  func.func @transform_5(%arg0: i32) -> (i32, i32) {
    %c0_i32 = arith.constant 0 : i32
    %c0_i32_0 = arith.constant 0 : i32
    %c0_i32_1 = arith.constant 0 : i32
    return %c0_i32, %c0_i32_0 : i32, i32
  }
  func.func @transform_6(%arg0: i32) -> (i32, i32) {
    %c0_i32 = arith.constant 0 : i32
    %c0_i32_0 = arith.constant 0 : i32
    return %arg0, %c0_i32 : i32, i32
  }
}

</mosaic_0001>

<bundles_post_ra>
// kernel: contextual_attention.1
= control target key start
LH: loop header
LB: loop body
LE: loop exit
PB: predicated region body
PF: predicated region fallthrough
CT: control target
= control target key end

     0   :  { %v285_v0 = vmov 0.0   ;;  %vm286_vm0 = vmmov 0   ;;  %vm44_vm1 = vcmask 130048   ;;  %vm113_vm2 = vcmask 261120   ;;  %s357_s1 = inlined_call_operand.vmem [shape: bf16[16,32], index: 1, kind: input, shape index: {}]   ;;  %s358_s0 = inlined_call_operand.vmem [shape: bf16[16,16], index: 0, kind: input, shape index: {}]   ;;  %s359_s2 = inlined_call_operand.vmem [shape: bf16[32,32], index: 2, kind: input, shape index: {}]   ;;  %s360_s4 = inlined_call_operand.vmem [shape: f32[2,32], index: 4, kind: input, shape index: {}]   ;;  %s361_s3 = inlined_call_operand.vmem [shape: bf16[32,4], index: 3, kind: input, shape index: {}]   ;;  %s362_s5 = inlined_call_operand.vmem [shape: f32[1,4], index: 5, kind: input, shape index: {}]   ;;  %s363_s6 = inlined_call_operand.vmem [shape: f32[16,4], index: 6, kind: output, shape index: {}]  }
   0x1   :  { %255 = vmatprep.subr.bf16.mxu0 %v285_v0  ;;  %v279_v1 = vld [vmem:[%s357_s1] sm:$0xff]   ;;  %257 = vmatprep.mubr.msk.bf16.mxu0 %vm286_vm0, %v285_v0  ;;  %v282_v4 = vld [vmem:[%s359_s2 + $0x8] sm:$0xff]   ;;  %vm228_vm3 = vcmask 31744  }
   0x2   :  { %v280_v2 = vld [vmem:[%s358_s0] sm:$0xff]   ;;  %261 = vmatprep.subr.bf16.mxu1 %v285_v0  ;;  %265 = vmatprep.mubr.msk.bf16.mxu1 %vm286_vm0, %v285_v0  ;;  %v284_v16 = vld [vmem:[%s361_s3 + $0x8] sm:$0xff]  }
   0x3   :  { %256 = vmatpush3.bf16.msra.mxu0 %v279_v1  ;;  %v281_v3 = vld [vmem:[%s359_s2] sm:$0xff]  }
   0x4   :  { %269 = vmatprep.subr.bf16.mxu0 %v285_v0  ;;  %262 = vmatpush3.bf16.msra.mxu1 %v281_v3  ;;  %v235_v5 = vld [vmem:[%s360_s4] ss:$0 sm:$0xff]  ;;  %v239_v17 = vld [vmem:[%s360_s4 + $0x1] ss:$0 sm:$0xff] }
   0x5   :  { %263 = vmatprep.subr.bf16.mxu1 %v285_v0  ;;  %v283_v15 = vld [vmem:[%s361_s3] sm:$0xff]  }
   0x6   :  { %258 = vmatmul.mubr.msk.bf16.vlgmr.msra.gmra.mrb[0].mxu0 %vm44_vm1, %v280_v2  ;;  %v243_v27 = vld [vmem:[%s362_s5] ss:$0 sm:$0xff] }
   0x7   :  { %273 = vmatprep.mubr.msk.bf16.mxu0 %vm286_vm0, %v285_v0  ;;  %270 = vmatpush3.bf16.msra.mxu0 %v283_v15 }
   0x8   :  { %264 = vmatpush3.bf16.msra.mxu1 %v282_v4  ;;  %271 = vmatprep.subr.bf16.mxu0 %v285_v0 }
   0xb   :  { %272 = vmatpush3.bf16.msra.mxu0 %v284_v16 }
  0xd9   :  { %v82_v6 = vpop.f32.mrb[0].mxu0 }
  0xda   :  { %v83_v7 = vadd.f32 %v235_v5, %v82_v6  ;;  %v259_v8 = vpop.f32.mrb[1].mxu0 }
  0xdb   :  { %v85_v9 = vpop.f32.mrb[2].mxu0 }
  0xdc   :  { %v86_v10 = vadd.f32 %v235_v5, %v85_v9  ;;  %v260_v11 = vpop.f32.mrb[3].mxu0  ;;  %v89_v12 = vmax.f32 %v83_v7, 0.0 }
  0xde   :  { %v90_v13 = vmax.f32 %v86_v10, 0.0 }
  0xe0   :  { %v91_v14 = vpack.c.bf16 %v90_v13, %v89_v12 }
  0xe2   :  { %266 = vmatmul.mubr.msk.bf16.vlgmr.msra.gmra.mrb[0].mxu1 %vm113_vm2, %v91_v14 }
 0x1b5   :  { %v151_v18 = vpop.f32.mrb[0].mxu1 }
 0x1b6   :  { %v152_v19 = vadd.f32 %v239_v17, %v151_v18  ;;  %v267_v20 = vpop.f32.mrb[1].mxu1 }
 0x1b7   :  { %v154_v21 = vpop.f32.mrb[2].mxu1 }
 0x1b8   :  { %v155_v22 = vadd.f32 %v239_v17, %v154_v21  ;;  %v268_v23 = vpop.f32.mrb[3].mxu1  ;;  %v158_v24 = vmax.f32 %v152_v19, 0.0 }
 0x1ba   :  { %v159_v25 = vmax.f32 %v155_v22, 0.0 }
 0x1bc   :  { %v160_v26 = vpack.c.bf16 %v159_v25, %v158_v24 }
 0x1be   :  { %274 = vmatmul.mubr.msk.bf16.vlgmr.msra.gmra.mrb[4].mxu0 %vm113_vm2, %v160_v26 }
 0x291   :  { %v221_v28 = vpop.f32.mrb[4].mxu0 }
 0x292   :  { %v222_v29 = vadd.f32 %v243_v27, %v221_v28  ;;  %v275_v30 = vpop.f32.mrb[5].mxu0 }
 0x293   :  { %v224_v31 = vpop.f32.mrb[6].mxu0 }
 0x294   :  { %229 = vst.msk [vmem:[%s363_s6] sm:$0xff] %vm228_vm3, %v222_v29  ;;  %v225_v32 = vadd.f32 %v243_v27, %v224_v31  ;;  %v276_v33 = vpop.f32.mrb[7].mxu0 }
 0x296   :  { %230 = vst.msk [vmem:[%s363_s6 + $0x8] sm:$0xff] %vm228_vm3, %v225_v32 }

</bundles_post_ra>
